<compile_context>
chip_gen: v5e
topology: v5e:2x2
jax: 0.10.0
libtpu: 0.0.40
codegen_flags: <defaults>
</compile_context>

<pallas_src>
import functools

import jax
import jax.numpy as jnp
from jax import lax
from jax.experimental import pallas as pl
from jax.experimental.pallas import tpu as pltpu

LAMBDA_ = 5.0
GAMMA = 2

_LANES = 128
_MAX_TILE_ROWS = 2048     # (2048,128) f32 block = 1 MiB; 3 inputs x 2 buffers = 6 MiB
_ROW_ALIGN = 32           # covers sublane packing for f32(8) / bf16(16) / int8,bool(32)
_MIN_KERNEL_ROWS = _ROW_ALIGN   # below this, kernel-launch overhead dominates


def _cdiv(a, b):
    return -(-a // b)


def _round_up(a, b):
    return _cdiv(a, b) * b


def _num_shards():
    """Extent of the leading 'parallel' grid axis: 2 on multi-TensorCore chips."""
    try:
        kind = jax.devices()[0].device_kind.lower()
    except Exception:
        return 1
    # TODO(synk): switch to pltpu.CORE_PARALLEL / pl.core_map if plain "parallel"
    # is observed not to shard this axis across the two TensorCores on v7x.
    if ("v7" in kind) or ("v4" in kind) or ("v5p" in kind):
        return 2
    return 1


def _adjusted_bce_kernel(o_ref, t_ref, m_ref, out_ref, *, lambda_, gamma,
                         hard_labels, steps_per_shard, tile_rows, valid_rows,
                         needs_mask):
    c = pl.program_id(0)
    j = pl.program_id(1)

    @pl.when(j == 0)
    def _():
        out_ref[...] = jnp.zeros_like(out_ref)

    o = o_ref[...].astype(jnp.float32)
    t = t_ref[...].astype(jnp.float32)
    m = m_ref[...].astype(jnp.float32)

    if hard_labels:
        # Single-log variant: only used when target dtype guarantees t in {0, 1}.
        bce_elem = -jnp.maximum(jnp.log(jnp.where(t > 0.5, o, 1.0 - o)), -100.0)
    else:
        # PyTorch's binary_cross_entropy clamps each log term at -100.
        log_o = jnp.maximum(jnp.log(o), -100.0)
        log_1mo = jnp.maximum(jnp.log(1.0 - o), -100.0)
        # -(t*log_o + (1-t)*log_1mo) == -(log_1mo + t*(log_o - log_1mo))
        bce_elem = -(log_1mo + t * (log_o - log_1mo))

    d = o - t
    if gamma == 2:
        diff_pow = d * d                      # pure VPU, no exp/log pow
    else:
        diff_pow = d ** gamma                 # Python int exponent -> repeated mults
    # lambda_*m*dp + (1-m)*dp == dp * (1 + (lambda_-1)*m)
    weighted = diff_pow * (1.0 + (lambda_ - 1.0) * m)

    if needs_mask:
        # Rows beyond `valid_rows` are either Pallas boundary padding (garbage) or
        # re-reads of the clamped last block for excess grid points: zero them with
        # a select (NOT a multiply, garbage may be inf/nan).
        row_off = (c * steps_per_shard + j) * tile_rows
        row_ids = lax.broadcasted_iota(jnp.int32, (tile_rows, 1), 0) + row_off
        valid = row_ids < valid_rows
        bce_elem = jnp.where(valid, bce_elem, 0.0)
        weighted = jnp.where(valid, weighted, 0.0)

    # Accumulate directly into the resident output block (index independent of j).
    out_ref[0, 0:1, :] += jnp.sum(bce_elem, axis=0, keepdims=True)
    out_ref[0, 1:2, :] += jnp.sum(weighted, axis=0, keepdims=True)


def _plain_sums(o, t, m, lambda_, gamma):
    """Per-element sums of the two reduction terms, in plain JAX (tail / tiny inputs)."""
    o = o.astype(jnp.float32)
    t = t.astype(jnp.float32)
    m = m.astype(jnp.float32)
    log_o = jnp.maximum(jnp.log(o), -100.0)
    log_1mo = jnp.maximum(jnp.log(1.0 - o), -100.0)
    bce = -(log_1mo + t * (log_o - log_1mo))
    dp = (o - t) ** gamma
    w = dp * (1.0 + (lambda_ - 1.0) * m)
    return jnp.sum(bce), jnp.sum(w)


def adjusted_bce_loss(output, target, mask, lambda_=LAMBDA_, gamma=GAMMA,
                      hard_labels=None):
    """Pallas implementation of AdjustedBCELoss.forward. Returns a scalar f32."""
    assert output.shape == target.shape == mask.shape
    gamma = int(gamma)
    lambda_ = float(lambda_)

    t_dtype = jnp.asarray(target).dtype if not hasattr(target, "dtype") else target.dtype
    if hard_labels is None:
        # Only safe when the dtype guarantees exact {0, 1} labels.
        hard_labels = bool(jnp.issubdtype(t_dtype, jnp.integer)
                           or jnp.issubdtype(t_dtype, jnp.bool_))

    n_total = int(output.size)
    flat_o = output.reshape(-1)
    flat_t = target.reshape(-1)
    flat_m = mask.reshape(-1)

    tail = n_total % _LANES
    n_main = n_total - tail
    rows = n_main // _LANES
    use_kernel = rows >= _MIN_KERNEL_ROWS
    kernel_elems = n_main if use_kernel else 0

    bce_sum = jnp.float32(0.0)
    w_sum = jnp.float32(0.0)

    if use_kernel:
        if kernel_elems == n_total:
            o_main, t_main, m_main = flat_o, flat_t, flat_m      # free reshape below
        else:
            # Rare ragged case (size not a multiple of 128): slice off the sub-128
            # tail (small extra copy only when it triggers); tail is summed in JAX.
            o_main = flat_o[:kernel_elems]
            t_main = flat_t[:kernel_elems]
            m_main = flat_m[:kernel_elems]
        o2 = o_main.reshape(rows, _LANES)        # native dtype, layout-preserving
        t2 = t_main.reshape(rows, _LANES)
        m2 = m_main.reshape(rows, _LANES)

        num_shards = _num_shards()
        tile_rows = min(_MAX_TILE_ROWS,
                        _round_up(_cdiv(rows, num_shards), _ROW_ALIGN))
        if tile_rows > rows:
            tile_rows = max(_ROW_ALIGN, (rows // _ROW_ALIGN) * _ROW_ALIGN)
        total_blocks = _cdiv(rows, tile_rows)
        num_shards = min(num_shards, total_blocks)
        steps_per_shard = _cdiv(total_blocks, num_shards)
        needs_mask = (num_shards * steps_per_shard * tile_rows != rows)

        def idx_map(c, j):
            # Clamp so boundary / excess grid points never point a DMA past the
            # array; the in-kernel row mask zeroes their contribution.
            return (jnp.minimum(c * steps_per_shard + j, total_blocks - 1), 0)

        tile_spec = pl.BlockSpec((tile_rows, _LANES), idx_map)

        kernel = functools.partial(
            _adjusted_bce_kernel, lambda_=lambda_, gamma=gamma,
            hard_labels=bool(hard_labels), steps_per_shard=steps_per_shard,
            tile_rows=tile_rows, valid_rows=rows, needs_mask=needs_mask)

        partials = pl.pallas_call(
            kernel,
            out_shape=jax.ShapeDtypeStruct((num_shards, 2, _LANES), jnp.float32),
            grid_spec=pltpu.PrefetchScalarGridSpec(
                num_scalar_prefetch=0,
                grid=(num_shards, steps_per_shard),
                in_specs=[tile_spec, tile_spec, tile_spec],
                out_specs=pl.BlockSpec((1, 2, _LANES), lambda c, j: (c, 0, 0)),
            ),
            compiler_params=pltpu.CompilerParams(
                dimension_semantics=("parallel", "arbitrary"),
                vmem_limit_bytes=32 * 1024 * 1024),
        )(o2, t2, m2)

        bce_sum = bce_sum + jnp.sum(partials[:, 0, :])
        w_sum = w_sum + jnp.sum(partials[:, 1, :])

    if kernel_elems < n_total:
        # Sub-128 tail (ragged sizes) or tiny-input fast path: plain JAX.
        tb, tw = _plain_sums(flat_o[kernel_elems:], flat_t[kernel_elems:],
                             flat_m[kernel_elems:], lambda_, gamma)
        bce_sum = bce_sum + tb
        w_sum = w_sum + tw

    n_f = jnp.float32(n_total)
    return (bce_sum / n_f) * (w_sum / n_f)


def _reference(output, target, mask, lambda_=LAMBDA_, gamma=GAMMA):
    o = output.astype(jnp.float32)
    t = target.astype(jnp.float32)
    m = mask.astype(jnp.float32)
    log_o = jnp.maximum(jnp.log(o), -100.0)
    log_1mo = jnp.maximum(jnp.log(1.0 - o), -100.0)
    bce = jnp.mean(-(t * log_o + (1.0 - t) * log_1mo))
    dp = (o - t) ** gamma
    adj = lambda_ * m * dp * bce + (1.0 - m) * dp * bce
    return jnp.mean(adj)


if __name__ == "__main__":
    # Small NCHW-shaped example inputs, deterministic.
    B, C, H, W = 2, 4, 32, 32          # 8192 elements -> 64 lane-rows, exercises kernel
    key = jax.random.PRNGKey(0)
    k_o, k_t, k_m = jax.random.split(key, 3)

    # output must be a probability in (0, 1) for BCE.
    output = jax.nn.sigmoid(jax.random.normal(k_o, (B, C, H, W), jnp.float32))
    target = jax.random.bernoulli(k_t, 0.5, (B, C, H, W)).astype(jnp.float32)
    mask = jax.random.bernoulli(k_m, 0.3, (B, C, H, W)).astype(jnp.float32)

    loss = jax.block_until_ready(adjusted_bce_loss(output, target, mask))
    ref = jax.block_until_ready(_reference(output, target, mask))
    assert jnp.allclose(loss, ref, rtol=1e-5, atol=1e-6), (loss, ref)

    print("KERNEL_OK")
</pallas_src>

<mosaic_0001>
module attributes {stable_mosaic.version = 11 : i64} {
  func.func @_adjusted_bce_kernel(%arg0: i32, %arg1: i32, %arg2: memref<64x128xf32, #tpu.memory_space<vmem>>, %arg3: memref<64x128xf32, #tpu.memory_space<vmem>>, %arg4: memref<64x128xf32, #tpu.memory_space<vmem>>, %arg5: memref<1x2x128xf32, #tpu.memory_space<vmem>>) attributes {dimension_semantics = [#tpu.dimension_semantics<parallel>, #tpu.dimension_semantics<arbitrary>], iteration_bounds = array<i64: 1, 1>, scalar_prefetch = 0 : i64, scratch_operands = 0 : i64, tpu.core_type = #tpu.core_type<tc>, window_params = [{transform_indices = @transform_0, window_bounds = array<i64: 64, 128>}, {transform_indices = @transform_1, window_bounds = array<i64: 64, 128>}, {transform_indices = @transform_2, window_bounds = array<i64: 64, 128>}, {transform_indices = @transform_3, window_bounds = array<i64: 1, 2, 128>}]} {
    %c0_i32 = arith.constant 0 : i32
    %0 = arith.cmpi eq, %arg1, %c0_i32 : i32
    %1 = arith.extui %0 : i1 to i32
    %c0_i32_0 = arith.constant 0 : i32
    %2 = arith.cmpi ne, %1, %c0_i32_0 : i32
    scf.if %2 {
      %cst_24 = arith.constant 0.000000e+00 : f32
      %42 = vector.broadcast %cst_24 : f32 to vector<1x2x128xf32>
      %c0_25 = arith.constant 0 : index
      %c0_26 = arith.constant 0 : index
      %c0_27 = arith.constant 0 : index
      %43 = vector.load %arg5[%c0_25, %c0_26, %c0_27] : memref<1x2x128xf32, #tpu.memory_space<vmem>>, vector<1x2x128xf32>
      tpu.vector_store %arg5[%c0_25, %c0_26, %c0_27], %42 {strides = array<i32>} : memref<1x2x128xf32, #tpu.memory_space<vmem>>, vector<1x2x128xf32>,
    } else {
    }
    %c0 = arith.constant 0 : index
    %c0_1 = arith.constant 0 : index
    %3 = vector.load %arg2[%c0, %c0_1] : memref<64x128xf32, #tpu.memory_space<vmem>>, vector<64x128xf32>
    %c0_2 = arith.constant 0 : index
    %c0_3 = arith.constant 0 : index
    %4 = vector.load %arg3[%c0_2, %c0_3] : memref<64x128xf32, #tpu.memory_space<vmem>>, vector<64x128xf32>
    %c0_4 = arith.constant 0 : index
    %c0_5 = arith.constant 0 : index
    %5 = vector.load %arg4[%c0_4, %c0_5] : memref<64x128xf32, #tpu.memory_space<vmem>>, vector<64x128xf32>
    %6 = math.log %3 : vector<64x128xf32>
    %cst = arith.constant -1.000000e+02 : f32
    %7 = vector.broadcast %cst : f32 to vector<64x128xf32>
    %8 = arith.maximumf %6, %7 : vector<64x128xf32>
    %cst_6 = arith.constant 1.000000e+00 : f32
    %9 = vector.broadcast %cst_6 : f32 to vector<64x128xf32>
    %10 = arith.subf %9, %3 : vector<64x128xf32>
    %11 = math.log %10 : vector<64x128xf32>
    %cst_7 = arith.constant -1.000000e+02 : f32
    %12 = vector.broadcast %cst_7 : f32 to vector<64x128xf32>
    %13 = arith.maximumf %11, %12 : vector<64x128xf32>
    %14 = arith.subf %8, %13 : vector<64x128xf32>
    %15 = arith.mulf %4, %14 : vector<64x128xf32>
    %16 = arith.addf %13, %15 : vector<64x128xf32>
    %cst_8 = arith.constant 0.000000e+00 : f32
    %17 = vector.broadcast %cst_8 : f32 to vector<64x128xf32>
    %18 = arith.subf %17, %16 : vector<64x128xf32>
    %19 = arith.subf %3, %4 : vector<64x128xf32>
    %20 = arith.mulf %19, %19 : vector<64x128xf32>
    %cst_9 = arith.constant 4.000000e+00 : f32
    %21 = vector.broadcast %cst_9 : f32 to vector<64x128xf32>
    %22 = arith.mulf %21, %5 : vector<64x128xf32>
    %cst_10 = arith.constant 1.000000e+00 : f32
    %23 = vector.broadcast %cst_10 : f32 to vector<64x128xf32>
    %24 = arith.addf %23, %22 : vector<64x128xf32>
    %25 = arith.mulf %20, %24 : vector<64x128xf32>
    %c0_11 = arith.constant 0 : index
    %c0_12 = arith.constant 0 : index
    %c0_13 = arith.constant 0 : index
    %26 = vector.load %arg5[%c0_11, %c0_12, %c0_13] : memref<1x2x128xf32, #tpu.memory_space<vmem>>, vector<1x1x128xf32>
    %27 = vector.shape_cast %26 : vector<1x1x128xf32> to vector<1x128xf32>
    %cst_14 = arith.constant dense<0.000000e+00> : vector<128xf32>
    %28 = vector.multi_reduction <add>, %18, %cst_14 [0] : vector<64x128xf32> to vector<128xf32>
    %29 = vector.shape_cast %28 : vector<128xf32> to vector<1x128xf32>
    %30 = arith.addf %27, %29 : vector<1x128xf32>
    %c0_15 = arith.constant 0 : index
    %c0_16 = arith.constant 0 : index
    %c0_17 = arith.constant 0 : index
    %31 = vector.load %arg5[%c0_15, %c0_16, %c0_17] : memref<1x2x128xf32, #tpu.memory_space<vmem>>, vector<1x1x128xf32>
    %32 = vector.shape_cast %31 : vector<1x1x128xf32> to vector<1x128xf32>
    %33 = vector.shape_cast %30 : vector<1x128xf32> to vector<1x1x128xf32>
    tpu.vector_store %arg5[%c0_15, %c0_16, %c0_17], %33 {strides = array<i32>} : memref<1x2x128xf32, #tpu.memory_space<vmem>>, vector<1x1x128xf32>,
    %c0_18 = arith.constant 0 : index
    %c1 = arith.constant 1 : index
    %c0_19 = arith.constant 0 : index
    %34 = vector.load %arg5[%c0_18, %c1, %c0_19] : memref<1x2x128xf32, #tpu.memory_space<vmem>>, vector<1x1x128xf32>
    %35 = vector.shape_cast %34 : vector<1x1x128xf32> to vector<1x128xf32>
    %cst_20 = arith.constant dense<0.000000e+00> : vector<128xf32>
    %36 = vector.multi_reduction <add>, %25, %cst_20 [0] : vector<64x128xf32> to vector<128xf32>
    %37 = vector.shape_cast %36 : vector<128xf32> to vector<1x128xf32>
    %38 = arith.addf %35, %37 : vector<1x128xf32>
    %c0_21 = arith.constant 0 : index
    %c1_22 = arith.constant 1 : index
    %c0_23 = arith.constant 0 : index
    %39 = vector.load %arg5[%c0_21, %c1_22, %c0_23] : memref<1x2x128xf32, #tpu.memory_space<vmem>>, vector<1x1x128xf32>
    %40 = vector.shape_cast %39 : vector<1x1x128xf32> to vector<1x128xf32>
    %41 = vector.shape_cast %38 : vector<1x128xf32> to vector<1x1x128xf32>
    tpu.vector_store %arg5[%c0_21, %c1_22, %c0_23], %41 {strides = array<i32>} : memref<1x2x128xf32, #tpu.memory_space<vmem>>, vector<1x1x128xf32>,
    return
  }
  func.func @transform_0(%arg0: i32, %arg1: i32) -> (i32, i32) {
    %c1_i32 = arith.constant 1 : i32
    %0 = arith.muli %arg0, %c1_i32 : i32
    %1 = arith.addi %0, %arg1 : i32
    %c0_i32 = arith.constant 0 : i32
    %2 = arith.minsi %1, %c0_i32 : i32
    %c0_i32_0 = arith.constant 0 : i32
    %c0_i32_1 = arith.constant 0 : i32
    return %2, %c0_i32_0 : i32, i32
  }
  func.func @transform_1(%arg0: i32, %arg1: i32) -> (i32, i32) {
    %c1_i32 = arith.constant 1 : i32
    %0 = arith.muli %arg0, %c1_i32 : i32
    %1 = arith.addi %0, %arg1 : i32
    %c0_i32 = arith.constant 0 : i32
    %2 = arith.minsi %1, %c0_i32 : i32
    %c0_i32_0 = arith.constant 0 : i32
    %c0_i32_1 = arith.constant 0 : i32
    return %2, %c0_i32_0 : i32, i32
  }
  func.func @transform_2(%arg0: i32, %arg1: i32) -> (i32, i32) {
    %c1_i32 = arith.constant 1 : i32
    %0 = arith.muli %arg0, %c1_i32 : i32
    %1 = arith.addi %0, %arg1 : i32
    %c0_i32 = arith.constant 0 : i32
    %2 = arith.minsi %1, %c0_i32 : i32
    %c0_i32_0 = arith.constant 0 : i32
    %c0_i32_1 = arith.constant 0 : i32
    return %2, %c0_i32_0 : i32, i32
  }
  func.func @transform_3(%arg0: i32, %arg1: i32) -> (i32, i32, i32) {
    %c0_i32 = arith.constant 0 : i32
    %c0_i32_0 = arith.constant 0 : i32
    %c0_i32_1 = arith.constant 0 : i32
    return %arg0, %c0_i32, %c0_i32_0 : i32, i32, i32
  }
}

</mosaic_0001>

<bundles_post_ra>
// kernel: tpu_custom_call.1
= control target key start
LH: loop header
LB: loop body
LE: loop exit
PB: predicated region body
PF: predicated region fallthrough
CT: control target
= control target key end

     0   :  { %8 = vsyncpa [#allocation3], 0  ;;  %s569_s0 = inlined_call_operand.hbm [shape: f32[64,128], index: 0, kind: input, shape index: {}]   ;;  %s570_s1 = inlined_call_operand.hbm [shape: f32[64,128], index: 1, kind: input, shape index: {}]   ;;  %s571_s2 = inlined_call_operand.hbm [shape: f32[64,128], index: 2, kind: input, shape index: {}]   ;;  %s572_s3 = inlined_call_operand.hbm [shape: f32[1,2,128], index: 3, kind: output, shape index: {}]  }
   0x1   :  { %9 = vsyncpa [#allocation6], 0 }
   0x2   :  { %10 = vsyncpa [#allocation4], 0  ;;  %s40_s14 = sshll.u32 %s570_s1, 4  ;;  %s446_s15 = smov [#allocation5]   ;;  %s41_s14 = int_to_ptr.hbm [resolvable:$true] %s40_s14 }
   0x3   :  { %s42_s16 = sshll.u32 %s446_s15, 4  ;;  %s21_s19 = sshll.u32 %s569_s0, 4  ;;  %s43_s16 = int_to_ptr.vmem [resolvable:$true] %s42_s16  ;;  %s22_s19 = int_to_ptr.hbm [resolvable:$true] %s21_s19 }
   0x4   :  { %s447_s20 = smov 128   ;;  %s448_s21 = smov 8  }
   0x5   :  { %48 = dma.hbm_to_vmem [thread:$0]  %s41_s14, 1024, %s43_s16, [#allocation6], %s447_s20, %s447_s20, %s448_s21  }
   0x6   :  { %s449_s22 = smov [#allocation2]   ;;  %s59_s26 = sshll.u32 %s571_s2, 4  ;;  %s60_s26 = int_to_ptr.hbm [resolvable:$true] %s59_s26 }
   0x7   :  { %s23_s23 = sshll.u32 %s449_s22, 4  ;;  %s450_s1 = smov [#allocation7]   ;;  %s24_s23 = int_to_ptr.vmem [resolvable:$true] %s23_s23 }
   0x8   :  { %29 = dma.hbm_to_vmem [thread:$0]  %s22_s19, 1024, %s24_s23, [#allocation3], %s447_s20, %s447_s20, %s448_s21  }
   0x9   :  { %s61_s27 = sshll.u32 %s450_s1, 4  ;;  %s62_s27 = int_to_ptr.vmem [resolvable:$true] %s61_s27 }
   0xa   :  { %67 = dma.hbm_to_vmem [thread:$0]  %s60_s26, 1024, %s62_s27, [#allocation6], %s447_s20, %s447_s20, %s448_s21  }
   0xb   :  { %440 = dma.done.wait [#allocation3], 1024  }
   0xc   :  { %441 = vsyncadd [#allocation3], 4294966272 }
   0xd   :  { %442 = dma.done.wait [#allocation6], 2048  }
   0xe   :  { %443 = vsyncadd [#allocation6], 4294965248  ;;  %v451_v0 = vmov 0.0   ;;  %v97_v1 = vld [vmem:[#allocation2] sm:$0xff]  ;;  %v98_v2 = vld [vmem:[#allocation2 + $0x8] sm:$0xff]  ;;  %s452_s0 = smov [#allocation8]  }
   0xf   :  { %96 = vst [vmem:[#allocation8] sm:$0x3] %v451_v0  ;;  %312 = vlog2.f32 %v97_v1  ;;  %v99_v3 = vld [vmem:[#allocation2 + $0x10] sm:$0xff]  ;;  %v100_v4 = vld [vmem:[#allocation2 + $0x18] sm:$0xff]  ;;  %v101_v5 = vld [vmem:[#allocation2 + $0x20] sm:$0xff]  ;;  %v145_v12 = vsub.f32 1.0, %v97_v1 }
  0x10   :  { %314 = vlog2.f32 %v98_v2  ;;  %v482_v6 = vld [vmem:[#allocation2 + $0x28] sm:$0xff]  ;;  %v484_v7 = vld [vmem:[#allocation5] sm:$0xff]  ;;  %v488_v9 = vld [vmem:[#allocation2 + $0x30] sm:$0xff]  ;;  %v146_v13 = vsub.f32 1.0, %v98_v2  ;;  %v147_v16 = vsub.f32 1.0, %v99_v3  ;;  %v148_v17 = vsub.f32 1.0, %v100_v4 }
  0x11   :  { %v486_v8 = vld [vmem:[#allocation5 + $0x8] sm:$0xff]  ;;  %316 = vlog2.f32 %v99_v3  ;;  %v490_v10 = vld [vmem:[#allocation5 + $0x10] sm:$0xff]  ;;  %v492_v11 = vld [vmem:[#allocation5 + $0x18] sm:$0xff]  ;;  %v149_v18 = vsub.f32 1.0, %v101_v5  ;;  %v150_v22 = vsub.f32 1.0, %v482_v6  ;;  %v209_v23 = vsub.f32 %v97_v1, %v484_v7  ;;  %s286_s2 = sshll.u32 %s452_s0, 4  ;;  %s287_s2 = int_to_ptr.vmem [resolvable:$true] %s286_s2 }
  0x12   :  { %318 = vlog2.f32 %v100_v4  ;;  %v494_v14 = vld [vmem:[#allocation2 + $0x38] sm:$0xff]  ;;  %v496_v15 = vld [vmem:[#allocation5 + $0x20] sm:$0xff]  ;;  %v498_v19 = vld [vmem:[#allocation5 + $0x28] sm:$0xff]  ;;  %v210_v24 = vsub.f32 %v98_v2, %v486_v8  ;;  %v151_v26 = vsub.f32 1.0, %v488_v9  ;;  %v211_v27 = vsub.f32 %v99_v3, %v490_v10  ;;  %s288_s30 = sshll.u32 %s572_s3, 4  ;;  %s289_s30 = int_to_ptr.hbm [resolvable:$true] %s288_s30 }
  0x13   :  { %320 = vlog2.f32 %v101_v5  ;;  %v500_v20 = vld [vmem:[#allocation5 + $0x30] sm:$0xff]  ;;  %v502_v21 = vld [vmem:[#allocation5 + $0x38] sm:$0xff]  ;;  %v212_v28 = vsub.f32 %v100_v4, %v492_v11  ;;  %v152_v31 = vsub.f32 1.0, %v494_v14  ;;  %v517_v32 = vsub.f32 %v101_v5, %v496_v15  ;;  %v113_v34 = vld [vmem:[#allocation7] sm:$0xff] }
  0x14   :  { %322 = vlog2.f32 %v482_v6  ;;  %v521_v35 = vsub.f32 %v482_v6, %v498_v19  ;;  %v525_v36 = vsub.f32 %v488_v9, %v500_v20  ;;  %v529_v37 = vsub.f32 %v494_v14, %v502_v21  ;;  %v114_v40 = vld [vmem:[#allocation7 + $0x8] sm:$0xff]  ;;  %v115_v45 = vld [vmem:[#allocation7 + $0x10] sm:$0xff]  ;;  %v116_v51 = vld [vmem:[#allocation7 + $0x18] sm:$0xff] }
  0x15   :  { %v313_v25 = vpop.eup %312  ;;  %324 = vlog2.f32 %v488_v9  ;;  %v533_v41 = vmul.f32 %v209_v23, %v209_v23  ;;  %v535_v42 = vmul.f32 %v210_v24, %v210_v24  ;;  %v537_v46 = vmul.f32 %v211_v27, %v211_v27  ;;  %v117_v56 = vld [vmem:[#allocation7 + $0x20] sm:$0xff]  ;;  %v118_v61 = vld [vmem:[#allocation7 + $0x28] sm:$0xff] }
  0x16   :  { %v315_v29 = vpop.eup %314  ;;  %v512_v30 = vmul.f32 0.6931472, %v313_v25  ;;  %326 = vlog2.f32 %v494_v14  ;;  %v539_v47 = vmul.f32 %v212_v28, %v212_v28  ;;  %v225_v52 = vmul.f32 4.0, %v113_v34 }
  0x17   :  { %v317_v33 = vpop.eup %316  ;;  %328 = vlog2.f32 %v145_v12  ;;  %v531_v39 = vmul.f32 0.6931472, %v315_v29  ;;  %v226_v57 = vmul.f32 4.0, %v114_v40  ;;  %v227_v62 = vmul.f32 4.0, %v115_v45 }
  0x18   :  { %v319_v38 = vpop.eup %318  ;;  %330 = vlog2.f32 %v146_v13  ;;  %v126_v44 = vmul.f32 0.6931472, %v317_v33  ;;  %v137_v50 = vmax.f32 %v512_v30, -100.0  ;;  %v228_v2 = vmul.f32 4.0, %v116_v51 }
  0x19   :  { %v321_v43 = vpop.eup %320  ;;  %332 = vlog2.f32 %v147_v16  ;;  %v128_v49 = vmul.f32 0.6931472, %v319_v38  ;;  %v138_v60 = vmax.f32 %v531_v39, -100.0  ;;  %v229_v6 = vmul.f32 4.0, %v117_v56 }
  0x1a   :  { %v323_v48 = vpop.eup %322  ;;  %334 = vlog2.f32 %v148_v17  ;;  %v130_v54 = vmul.f32 0.6931472, %v321_v43  ;;  %v139_v1 = vmax.f32 %v126_v44, -100.0  ;;  %v543_v16 = vmul.f32 4.0, %v118_v61 }
  0x1b   :  { %v325_v53 = vpop.eup %324  ;;  %v132_v55 = vmul.f32 0.6931472, %v323_v48  ;;  %336 = vlog2.f32 %v149_v18  ;;  %v140_v4 = vmax.f32 %v128_v49, -100.0  ;;  %v233_v28 = vadd.f32 1.0, %v225_v52 }
  0x1c   :  { %v327_v58 = vpop.eup %326  ;;  %v134_v59 = vmul.f32 0.6931472, %v325_v53  ;;  %338 = vlog2.f32 %v150_v22  ;;  %v141_v12 = vmax.f32 %v130_v54, -100.0  ;;  %v234_v29 = vadd.f32 1.0, %v226_v57 }
  0x1d   :  { %v329_v63 = vpop.eup %328  ;;  %v136_v0 = vmul.f32 0.6931472, %v327_v58  ;;  %340 = vlog2.f32 %v151_v26  ;;  %v142_v13 = vmax.f32 %v132_v55, -100.0  ;;  %v235_v38 = vadd.f32 1.0, %v227_v62 }
  0x1e   :  { %v331_v3 = vpop.eup %330  ;;  %v154_v5 = vmul.f32 0.6931472, %v329_v63  ;;  %342 = vlog2.f32 %v152_v31  ;;  %v143_v18 = vmax.f32 %v134_v59, -100.0  ;;  %v236_v45 = vadd.f32 1.0, %v228_v2 }
  0x1f   :  { %v333_v9 = vpop.eup %332  ;;  %v156_v14 = vmul.f32 0.6931472, %v331_v3  ;;  %v144_v22 = vmax.f32 %v136_v0, -100.0 }
  0x20   :  { %v335_v17 = vpop.eup %334  ;;  %v158_v23 = vmul.f32 0.6931472, %v333_v9  ;;  %v169_v24 = vmax.f32 %v154_v5, -100.0 }
  0x21   :  { %v337_v25 = vpop.eup %336  ;;  %v160_v27 = vmul.f32 0.6931472, %v335_v17  ;;  %v170_v26 = vmax.f32 %v156_v14, -100.0  ;;  %v119_v14 = vld [vmem:[#allocation7 + $0x30] sm:$0xff] }
  0x22   :  { %v339_v30 = vpop.eup %338  ;;  %v162_v33 = vmul.f32 0.6931472, %v337_v25  ;;  %v171_v31 = vmax.f32 %v158_v23, -100.0  ;;  %v177_v34 = vsub.f32 %v137_v50, %v169_v24  ;;  %v231_v25 = vmul.f32 4.0, %v119_v14 }
  0x23   :  { %v341_v39 = vpop.eup %340  ;;  %v164_v40 = vmul.f32 0.6931472, %v339_v30  ;;  %v172_v43 = vmax.f32 %v160_v27, -100.0  ;;  %v178_v44 = vsub.f32 %v138_v60, %v170_v26  ;;  %v242_v27 = vmul.f32 %v234_v29, %v535_v42 }
  0x24   :  { %v343_v48 = vpop.eup %342  ;;  %v166_v49 = vmul.f32 0.6931472, %v341_v39  ;;  %v173_v51 = vmax.f32 %v162_v33, -100.0  ;;  %v179_v53 = vsub.f32 %v139_v1, %v171_v31  ;;  %v185_v54 = vmul.f32 %v177_v34, %v484_v7 }
  0x25   :  { %v168_v55 = vmul.f32 0.6931472, %v343_v48  ;;  %v174_v56 = vmax.f32 %v164_v40, -100.0  ;;  %v180_v52 = vsub.f32 %v140_v4, %v172_v43  ;;  %v186_v57 = vmul.f32 %v178_v44, %v486_v8 }
  0x26   :  { %v175_v58 = vmax.f32 %v166_v49, -100.0  ;;  %v181_v59 = vsub.f32 %v141_v12, %v173_v51  ;;  %v187_v50 = vmul.f32 %v179_v53, %v490_v10  ;;  %v193_v61 = vadd.f32 %v185_v54, %v169_v24 }
  0x27   :  { %v176_v62 = vmax.f32 %v168_v55, -100.0  ;;  %v182_v63 = vsub.f32 %v142_v13, %v174_v56  ;;  %v188_v60 = vmul.f32 %v180_v52, %v492_v11  ;;  %v194_v0 = vadd.f32 %v186_v57, %v170_v26 }
  0x28   :  { %v183_v2 = vsub.f32 %v143_v18, %v175_v58  ;;  %v189_v1 = vmul.f32 %v181_v59, %v496_v15  ;;  %v195_v3 = vadd.f32 %v187_v50, %v171_v31  ;;  %v201_v7 = vsub.f32 0.0, %v193_v61  ;;  %v120_v15 = vld [vmem:[#allocation7 + $0x38] sm:$0xff] }
  0x29   :  { %v184_v5 = vsub.f32 %v144_v22, %v176_v62  ;;  %v190_v4 = vmul.f32 %v182_v63, %v498_v19  ;;  %v196_v9 = vadd.f32 %v188_v60, %v172_v43  ;;  %v202_v8 = vsub.f32 0.0, %v194_v0  ;;  %v249_v60 = vld [vmem:[#allocation8] sm:$0x1] }
  0x2a   :  { %v191_v12 = vmul.f32 %v183_v2, %v500_v20  ;;  %v197_v10 = vadd.f32 %v189_v1, %v173_v51  ;;  %v203_v17 = vsub.f32 0.0, %v195_v3  ;;  %v241_v13 = vmul.f32 %v233_v28, %v533_v41 }
  0x2b   :  { %v192_v11 = vmul.f32 %v184_v5, %v502_v21  ;;  %v198_v23 = vadd.f32 %v190_v4, %v174_v56  ;;  %v204_v18 = vsub.f32 0.0, %v196_v9  ;;  %v250_v24 = vadd.f32 %v202_v8, %v201_v7  ;;  %v265_v7 = vld [vmem:[#allocation8 + $0x1] sm:$0x1] }
  0x2c   :  { %v221_v22 = vmul.f32 %v517_v32, %v517_v32  ;;  %v237_v19 = vadd.f32 1.0, %v229_v6  ;;  %v199_v26 = vadd.f32 %v191_v12, %v175_v58  ;;  %v205_v30 = vsub.f32 0.0, %v197_v10 }
  0x2d   :  { %v251_v20 = vadd.f32 %v250_v24, %v203_v17  ;;  %v243_v33 = vmul.f32 %v235_v38, %v537_v46  ;;  %v200_v31 = vadd.f32 %v192_v11, %v176_v62  ;;  %v222_v21 = vmul.f32 %v521_v35, %v521_v35 }
  0x2e   :  { %v232_v41 = vmul.f32 4.0, %v120_v15  ;;  %v238_v28 = vadd.f32 1.0, %v543_v16  ;;  %v206_v34 = vsub.f32 0.0, %v198_v23  ;;  %v244_v32 = vmul.f32 %v236_v45, %v539_v47 }
  0x2f   :  { %v252_v39 = vadd.f32 %v251_v20, %v204_v18  ;;  %v266_v40 = vadd.f32 %v242_v27, %v241_v13  ;;  %v223_v42 = vmul.f32 %v525_v36, %v525_v36  ;;  %v239_v6 = vadd.f32 1.0, %v231_v25 }
  0x30   :  { %v207_v29 = vsub.f32 0.0, %v199_v26  ;;  %v245_v44 = vmul.f32 %v237_v19, %v221_v22  ;;  %v224_v38 = vmul.f32 %v529_v37, %v529_v37  ;;  %v240_v35 = vadd.f32 1.0, %v232_v41 }
  0x31   :  { %v253_v43 = vadd.f32 %v252_v39, %v205_v30  ;;  %v267_v46 = vadd.f32 %v266_v40, %v243_v33  ;;  %v208_v48 = vsub.f32 0.0, %v200_v31  ;;  %v246_v16 = vmul.f32 %v238_v28, %v222_v21 }
  0x32   :  { %v247_v54 = vmul.f32 %v239_v6, %v223_v42  ;;  %v248_v55 = vmul.f32 %v240_v35, %v224_v38 }
  0x33   :  { %v254_v49 = vadd.f32 %v253_v43, %v206_v34  ;;  %v268_v51 = vadd.f32 %v267_v46, %v244_v32 }
  0x35   :  { %v255_v53 = vadd.f32 %v254_v49, %v207_v29  ;;  %v269_v47 = vadd.f32 %v268_v51, %v245_v44 }
  0x37   :  { %v256_v45 = vadd.f32 %v255_v53, %v208_v48  ;;  %v270_v56 = vadd.f32 %v269_v47, %v246_v16 }
  0x39   :  { %v257_v36 = vrot.slane %v256_v45, 4  ;;  %v271_v52 = vadd.f32 %v270_v56, %v247_v54 }
  0x3b   :  { %v258_v57 = vadd.f32 %v257_v36, %v256_v45  ;;  %v272_v58 = vadd.f32 %v271_v52, %v248_v55 }
  0x3d   :  { %v259_v59 = vrot.slane %v258_v57, 2  ;;  %v273_v50 = vrot.slane %v272_v58, 4 }
  0x3f   :  { %v260_v61 = vadd.f32 %v259_v59, %v258_v57  ;;  %v274_v62 = vadd.f32 %v273_v50, %v272_v58 }
  0x41   :  { %v261_v37 = vrot.slane %v260_v61, 1  ;;  %v275_v63 = vrot.slane %v274_v62, 2 }
  0x43   :  { %v262_v0 = vadd.f32 %v261_v37, %v260_v61  ;;  %v276_v2 = vadd.f32 %v275_v63, %v274_v62 }
  0x45   :  { %v263_v1 = vadd.f32 %v262_v0, %v249_v60  ;;  %v277_v3 = vrot.slane %v276_v2, 1 }
  0x47   :  { %264 = vst [vmem:[#allocation8] sm:$0x1] %v263_v1  ;;  %v278_v5 = vadd.f32 %v277_v3, %v276_v2 }
  0x49   :  { %v279_v4 = vadd.f32 %v278_v5, %v265_v7 }
  0x4b   :  { %280 = vst [vmem:[#allocation8 + $0x1] sm:$0x1] %v279_v4 }
  0x4c   :  { %291 = dma.vmem_to_hbm [thread:$0]  %s287_s2, 32, %s289_s30, [#allocation4]  }
  0x4d   :  { %444 = dma.done.wait [#allocation4], 32  }
  0x4e   :  { %445 = vsyncadd [#allocation4], 4294967264 }
  0x4f   :  { %296 = vsyncpa [#allocation3], 1 }
  0x50   :  { %297 = vsyncpa [#allocation6], 1 }
  0x51   :  { %298 = vsyncpa [#allocation4], 1 }

</bundles_post_ra>
